<compile_context>
chip_gen: v7x
topology: tpu7x:2x2x1
jax: 0.10.0
libtpu: 0.0.40
codegen_flags: <defaults>
</compile_context>

<pallas_src>
import functools

import jax
import jax.numpy as jnp
from jax.experimental import pallas as pl
from jax.experimental.pallas import tpu as pltpu


def _haar_col_matrix(w, dtype):
    """(W, W) matrix C = [lowpass | highpass]; y @ C pairs adjacent columns.

    Columns 0..W/2-1 give 0.5*(y[:, 2j] + y[:, 2j+1]);
    columns W/2..W-1 give 0.5*(y[:, 2j] - y[:, 2j+1]).
    The 0.5 carries the full 2D Haar normalization (1/sqrt(2) per axis).
    """
    half = w // 2
    rows = jnp.arange(w)
    cols = jnp.arange(half)
    hit = (rows[:, None] // 2) == cols[None, :]
    lo = jnp.where(hit, 0.5, 0.0)
    sign = jnp.where(rows % 2 == 0, 1.0, -1.0)
    hi = lo * sign[:, None]
    return jnp.concatenate([lo, hi], axis=1).astype(dtype)


def _haar_dwt2_kernel(xp_ref, cmat_ref, lo_ref, hi_ref, *, w):
    xp = xp_ref[...]                     # (rblk, 2W): [even image row | odd image row]
    even = xp[:, :w]
    odd = xp[:, w:]
    row_lo = even + odd                  # un-normalized vertical low-pass  (VPU)
    row_hi = even - odd                  # un-normalized vertical high-pass (VPU)
    cmat = cmat_ref[...]                 # (W, W); carries the overall 1/2 factor
    # Two MXU matmuls; results are stored as full-width lane-dense slabs with
    # no post-matmul slicing: lo = [cA | cV], hi = [cH | cD].
    lo_ref[...] = jnp.dot(row_lo, cmat,
                          preferred_element_type=jnp.float32).astype(lo_ref.dtype)
    hi_ref[...] = jnp.dot(row_hi, cmat,
                          preferred_element_type=jnp.float32).astype(hi_ref.dtype)


def _round_up(x, m):
    return ((x + m - 1) // m) * m


def _choose_row_block(rows, w, itemsize, target_bytes=2 << 20, min_blocks=8):
    """Row tile from a byte budget (~2 MiB of block I/O), multiple of 8,
    capped so the grid has >= min_blocks steps whenever `rows` allows."""
    if rows <= 8:
        return rows                      # block dim == full array dim (always legal)
    bytes_per_row = 4 * w * itemsize     # input (2W) + both output slabs (2W)
    rblk = max(8, (target_bytes // bytes_per_row) // 8 * 8)
    # Keep >= min_blocks grid steps: v7x has 2 TensorCores sharding a
    # "parallel" axis, and >1 block restores DMA/compute double-buffering.
    rblk = min(rblk, max(8, _round_up(pl.cdiv(rows, min_blocks), 8)))
    return int(rblk)


def haar_dwt2_slabs(x):
    """x[B,C,H,W] -> (lo, hi), lo=[cA|cV], hi=[cH|cD], each (B,C,H/2,W)."""
    b, c, h, w = x.shape
    assert h % 2 == 0 and w % 2 == 0, "db1 level-1 DWT needs even H and W"

    if x.dtype == jnp.bfloat16:
        cdtype = jnp.bfloat16            # 0/+-0.5 are exact in bf16
    else:
        cdtype = jnp.float32
        if x.dtype != jnp.float32:       # guard integer / low-precision inputs
            x = x.astype(jnp.float32)

    rows = b * c * (h // 2)              # one kernel row per vertical pixel pair
    xp = x.reshape(rows, 2 * w)          # pure row-major reshape: no data movement
    itemsize = xp.dtype.itemsize
    cmat_itemsize = jnp.dtype(cdtype).itemsize

    rblk = _choose_row_block(rows, w, itemsize)
    grid = (pl.cdiv(rows, rblk),)        # partial last block is fine (writes clamped)
    cmat = _haar_col_matrix(w, cdtype)

    # VMEM budget: double-buffered input + two outputs, cmat (conservatively x2),
    # plus f32 intermediates.  Sized for v7x's 64 MiB physical VMEM.
    in_blk = rblk * 2 * w * itemsize
    out_blk = 2 * rblk * w * itemsize
    scratch = 4 * rblk * w * 4
    vmem_needed = 2 * (in_blk + out_blk) + 2 * w * w * cmat_itemsize + scratch
    vmem_limit = int(min(max(2 * vmem_needed, 16 << 20), 48 << 20))

    # HBM-bound custom call: ~8 B/element; tiny matmul flop count.
    cost = pl.CostEstimate(
        flops=4 * rows * w * w + 2 * rows * w,
        transcendentals=0,
        bytes_accessed=xp.size * itemsize + 2 * rows * w * itemsize
        + w * w * cmat_itemsize,
    )

    kernel = functools.partial(_haar_dwt2_kernel, w=w)
    out_sds = jax.ShapeDtypeStruct((rows, w), xp.dtype)
    lo, hi = pl.pallas_call(
        kernel,
        out_shape=(out_sds, out_sds),
        grid_spec=pltpu.PrefetchScalarGridSpec(
            num_scalar_prefetch=0,
            grid=grid,
            in_specs=[
                pl.BlockSpec((rblk, 2 * w), lambda i: (i, 0)),
                pl.BlockSpec((w, w), lambda i: (0, 0)),   # resident combine matrix
            ],
            out_specs=[
                pl.BlockSpec((rblk, w), lambda i: (i, 0)),
                pl.BlockSpec((rblk, w), lambda i: (i, 0)),
            ],
        ),
        compiler_params=pltpu.CompilerParams(
            dimension_semantics=("parallel",),
            vmem_limit_bytes=vmem_limit),
        cost_estimate=cost,
    )(xp, cmat)

    shp = (b, c, h // 2, w)
    return lo.reshape(shp), hi.reshape(shp)


def haar_dwt2_pallas(x):
    """Single-level 2D 'db1' DWT of x[B, C, H, W] -> (cA, cH, cV, cD)."""
    w = x.shape[-1]
    half = w // 2
    lo, hi = haar_dwt2_slabs(x)          # lane-dense kernel outputs
    ca, cv = lo[..., :half], lo[..., half:]
    ch, cd = hi[..., :half], hi[..., half:]
    return ca, ch, cv, cd


# TODO(synk): only the module's default wavelet 'db1' (Haar) is implemented;
# general pywt wavelets need arbitrary-length filter banks with symmetric
# boundary padding (and waverec2 for backward), which is not expressed here.


def _haar_dwt2_reference(x):
    a = x[..., 0::2, 0::2]
    bb = x[..., 0::2, 1::2]
    cc = x[..., 1::2, 0::2]
    dd = x[..., 1::2, 1::2]
    ca = (a + bb + cc + dd) * 0.5
    ch = (a + bb - cc - dd) * 0.5
    cv = (a - bb + cc - dd) * 0.5
    cd = (a - bb - cc + dd) * 0.5
    return ca, ch, cv, cd


if __name__ == "__main__":
    key = jax.random.PRNGKey(0)
    B, C, H, W = 2, 4, 16, 16
    x = jax.random.normal(key, (B, C, H, W), jnp.float32)

    wavelet_fwd = jax.jit(haar_dwt2_pallas)
    outs = jax.block_until_ready(wavelet_fwd(x))
    refs = _haar_dwt2_reference(x)
    for got, ref in zip(outs, refs):
        assert got.shape == (B, C, H // 2, W // 2), got.shape
        assert jnp.allclose(got, ref, atol=1e-5, rtol=1e-5), float(
            jnp.max(jnp.abs(got - ref)))

    # Second shape: row count not a multiple of the row tile -> exercises the
    # cdiv grid / partial-last-block path.
    x2 = jax.random.normal(key, (1, 3, 6, 16), jnp.float32)
    outs2 = jax.block_until_ready(jax.jit(haar_dwt2_pallas)(x2))
    refs2 = _haar_dwt2_reference(x2)
    for got, ref in zip(outs2, refs2):
        assert got.shape == (1, 3, 3, 8), got.shape
        assert jnp.allclose(got, ref, atol=1e-5, rtol=1e-5), float(
            jnp.max(jnp.abs(got - ref)))

    print("KERNEL_OK")
</pallas_src>

<mosaic_0001>
module attributes {stable_mosaic.version = 11 : i64} {
  func.func @_haar_dwt2_kernel(%arg0: i32, %arg1: memref<8x32xf32, #tpu.memory_space<vmem>>, %arg2: memref<16x16xf32, #tpu.memory_space<vmem>>, %arg3: memref<8x16xf32, #tpu.memory_space<vmem>>, %arg4: memref<8x16xf32, #tpu.memory_space<vmem>>) attributes {dimension_semantics = [#tpu.dimension_semantics<parallel>], iteration_bounds = array<i64: 8>, scalar_prefetch = 0 : i64, scratch_operands = 0 : i64, tpu.core_type = #tpu.core_type<tc>, window_params = [{transform_indices = @transform_0, window_bounds = array<i64: 8, 32>}, {pipeline_mode = #tpu.pipeline_mode<synchronous>, transform_indices = @transform_1, window_bounds = array<i64: 16, 16>}, {transform_indices = @transform_2, window_bounds = array<i64: 8, 16>}, {transform_indices = @transform_3, window_bounds = array<i64: 8, 16>}]} {
    %c0 = arith.constant 0 : index
    %c0_0 = arith.constant 0 : index
    %0 = vector.load %arg1[%c0, %c0_0] : memref<8x32xf32, #tpu.memory_space<vmem>>, vector<8x32xf32>
    %1 = vector.extract_strided_slice %0 {offsets = [0, 0], sizes = [8, 16], strides = [1, 1]} : vector<8x32xf32> to vector<8x16xf32>
    %2 = vector.extract_strided_slice %0 {offsets = [0, 16], sizes = [8, 16], strides = [1, 1]} : vector<8x32xf32> to vector<8x16xf32>
    %3 = arith.addf %1, %2 : vector<8x16xf32>
    %4 = arith.subf %1, %2 : vector<8x16xf32>
    %c0_1 = arith.constant 0 : index
    %c0_2 = arith.constant 0 : index
    %5 = vector.load %arg2[%c0_1, %c0_2] : memref<16x16xf32, #tpu.memory_space<vmem>>, vector<16x16xf32>
    %cst = arith.constant dense<0.000000e+00> : vector<8x16xf32>
    %6 = tpu.matmul %3, %5, %cst {dimension_numbers = #tpu.dot_dimension_numbers<[1], [0], [0], [1], [0, 0, 1, 1], [], []>} : vector<8x16xf32>, vector<16x16xf32>, vector<8x16xf32> -> vector<8x16xf32>
    %c0_3 = arith.constant 0 : index
    %c0_4 = arith.constant 0 : index
    %7 = vector.load %arg3[%c0_3, %c0_4] : memref<8x16xf32, #tpu.memory_space<vmem>>, vector<8x16xf32>
    tpu.vector_store %arg3[%c0_3, %c0_4], %6 {strides = array<i32>} : memref<8x16xf32, #tpu.memory_space<vmem>>, vector<8x16xf32>,
    %cst_5 = arith.constant dense<0.000000e+00> : vector<8x16xf32>
    %8 = tpu.matmul %4, %5, %cst_5 {dimension_numbers = #tpu.dot_dimension_numbers<[1], [0], [0], [1], [0, 0, 1, 1], [], []>} : vector<8x16xf32>, vector<16x16xf32>, vector<8x16xf32> -> vector<8x16xf32>
    %c0_6 = arith.constant 0 : index
    %c0_7 = arith.constant 0 : index
    %9 = vector.load %arg4[%c0_6, %c0_7] : memref<8x16xf32, #tpu.memory_space<vmem>>, vector<8x16xf32>
    tpu.vector_store %arg4[%c0_6, %c0_7], %8 {strides = array<i32>} : memref<8x16xf32, #tpu.memory_space<vmem>>, vector<8x16xf32>,
    return
  }
  func.func @transform_0(%arg0: i32) -> (i32, i32) {
    %c0_i32 = arith.constant 0 : i32
    %c0_i32_0 = arith.constant 0 : i32
    return %arg0, %c0_i32 : i32, i32
  }
  func.func @transform_1(%arg0: i32) -> (i32, i32) {
    %c0_i32 = arith.constant 0 : i32
    %c0_i32_0 = arith.constant 0 : i32
    %c0_i32_1 = arith.constant 0 : i32
    return %c0_i32, %c0_i32_0 : i32, i32
  }
  func.func @transform_2(%arg0: i32) -> (i32, i32) {
    %c0_i32 = arith.constant 0 : i32
    %c0_i32_0 = arith.constant 0 : i32
    return %arg0, %c0_i32 : i32, i32
  }
  func.func @transform_3(%arg0: i32) -> (i32, i32) {
    %c0_i32 = arith.constant 0 : i32
    %c0_i32_0 = arith.constant 0 : i32
    return %arg0, %c0_i32 : i32, i32
  }
}

</mosaic_0001>

<bundles_post_ra>
// kernel: haar_dwt2_pallas.1
= control target key start
LH: loop header
LB: loop body
LE: loop exit
PB: predicated region body
PF: predicated region fallthrough
CT: control target
= control target key end

     0   :  { %s501_s12 = smov 0   ;;  %s527_s0 = inlined_call_operand.vmem [shape: f32[64,32], index: 0, kind: input, shape index: {}]   ;;  %s528_s1 = inlined_call_operand.vmem [shape: f32[16,16], index: 1, kind: input, shape index: {}]   ;;  %s529_s2 = inlined_call_operand.vmem [shape: f32[64,16], index: 2, kind: output, shape index: {0}]   ;;  %s530_s3 = inlined_call_operand.vmem [shape: f32[64,16], index: 3, kind: output, shape index: {1}]  }
   0x1 LB: > { %s419_s13 = sadd.s32 4294967295, %s475_s12   ;;  %p423_p0 = scmp.ge.s32.totalorder %s475_s12, 1  ;;  %s475_s12 = sphi %s501_s12, %s14_s12  }
   0x2   : > { %p139_p1 = scmp.lt.s32.totalorder %s475_s12, 9 }
   0x4   : > { %p140_p2 = pnand %p423_p0, %p139_p1 }
   0x5   : > { %p165_p3 = scmp.lt.s32.totalorder (!%p140_p2), %s419_s13, 7  ;;  %v184_v0 = vld [vmem:[%s528_s1] sm:$0xff] (!%p140_p2)  ;;  %v185_v1 = vld [vmem:[%s528_s1 + $0x8] sm:$0xff] (!%p140_p2)  ;;  %v477_v2 = vmov (!%p140_p2), 0.0|0.0   ;;  %vm478_vm0 = vmmov (!%p140_p2), 0   ;;  %v479_v4 = vmov (!%p140_p2), 0.0  }
   0x6   : > { %143 = sbr.rel (%p140_p2) target bundleno = 347 (0x15b), region = 28  ;;  %451 = vmatprep.subr.bf16.mxu0 (!%p140_p2), %v477_v2  ;;  %454 = vmatprep.subr.bf16.mxu1 (!%p140_p2), %v477_v2  ;;  %v452_v3 = vpack.c.bf16 (!%p140_p2), %v185_v1, %v184_v0  ;;  %s480_s22 = smov (!%p140_p2), 112   ;;  %vm186_vm1 = vcmask (!%p140_p2), 130048  }
   0x7   : > { %441 = vmatprep.mubr.msk.f32.mxu0 (!%p140_p2), %vm478_vm0, %v479_v4  ;;  %448 = vmatprep.mubr.msk.f32.mxu1 (!%p140_p2), %vm478_vm0, %v479_v4 }
   0x8   : > { %453 = vmatpush3.bf16.msra.mxu0 (!%p140_p2), %v452_v3  ;;  %456 = vmatpush3.bf16.msra.mxu1 (!%p140_p2), %v452_v3 }
   0xd   : > { %s532_s13 = smov (!%p165_p3, %s419_s13), 7 }
   0xe   : > { %s424_s18 = sshll.u32 %s532_s13, 3 }
   0xf   : > { %s168_s21 = scalar_lea.vmem %s527_s0, %s424_s18  ;;  %s172_s25 = scalar_lea.vmem %s529_s2, %s424_s18 }
  0x10   : > { %v177_v5 = vld [vmem:[%s168_s21] sm:$0xff]  ;;  %s176_s28 = scalar_lea.vmem %s530_s3, %s424_s18 }
  0x11   : > { %179 = vrot.lane.b32.xlu0 %v177_v5, %s480_s22 }
  0x83   : > { %v180_v6 = vpop.permute.xlu0 %179 }
  0x84   : > { %v182_v7 = vadd.f32 %v180_v6, %v177_v5  ;;  %v183_v8 = vsub.f32 %v177_v5, %v180_v6 }
  0x86   : > { %442 = vmatmul.mubr.msk.f32.vlgmr.msra.gmra.mrb[0].mxu0 %vm186_vm1, %v182_v7  ;;  %449 = vmatmul.mubr.msk.f32.vlgmr.msra.gmra.mrb[0].mxu1 %vm186_vm1, %v183_v8 }
 0x159   : > { %v256_v9 = vpop.f32.mrb[0].mxu0  ;;  %v330_v10 = vpop.f32.mrb[0].mxu1 }
 0x15a   : > { %260 = vst.msk [vmem:[%s172_s25] sm:$0xff] %vm186_vm1, %v256_v9  ;;  %334 = vst.msk [vmem:[%s176_s28] sm:$0xff] %vm186_vm1, %v330_v10  ;;  %v443_v11 = vpop.f32.mrb[1].mxu0  ;;  %v450_v12 = vpop.f32.mrb[1].mxu1 }
 0x15b PF: > { %s14_s12 = sadd.s32 1, %s475_s12  }
 0x15c   : > { %p11_p4 = scmp.ge.s32.totalorder %s14_s12, 10  }
 0x15e   :  { %13 = sbr.rel (!%p11_p4) target bundleno = 1 (0x1), region = 70 }

</bundles_post_ra>
